<compile_context>
chip_gen: v5e
topology: v5e:2x2
jax: 0.10.0
libtpu: 0.0.40
codegen_flags: <defaults>
</compile_context>

<pallas_src>
import jax
import jax.numpy as jnp
from jax.experimental import pallas as pl
from jax.experimental.pallas import tpu as pltpu

EPS = 1e-5
LANE = 128


def _round_up(v, m):
    return ((v + m - 1) // m) * m


def _subkeycolumn_kernel(x_ref, wt_ref, gamma_ref, beta_ref, out_ref):
    k = pl.program_id(1)

    @pl.when(k == 0)
    def _():
        out_ref[...] = jnp.zeros_like(out_ref)

    # Linear partial product on the MXU: native streaming dtype, f32 accumulation
    # directly into the resident (B, tn) f32 output block.
    out_ref[...] += jnp.dot(
        x_ref[...], wt_ref[...], preferred_element_type=jnp.float32
    )

    @pl.when(k == pl.num_programs(1) - 1)
    def _():
        y = out_ref[...]                                    # [B, tn], f32 linear output
        mean = jnp.mean(y, axis=0, keepdims=True)           # per-column batch mean
        yc = y - mean                                       # centered once, reused
        var = jnp.mean(yc * yc, axis=0, keepdims=True)      # biased batch variance
        scale = gamma_ref[...] * jax.lax.rsqrt(var + EPS)   # [1, tn]
        out_ref[...] = yc * scale + beta_ref[...]


def prepare_params(w, b, gamma, beta, *, tk_max=512, tn_max=512, compute_dtype=None):
    """One-time (cacheable) weight prep: pre-transpose W to [K, N], zero-pad K/N to the
    tile grid, pad gamma/beta. `b` is intentionally dropped: it cancels exactly under
    training-mode BatchNorm (mean subtraction)."""
    del b
    outdim, indim = w.shape
    assert indim % 2 == 0 and outdim == indim // 2

    tk = min(_round_up(tk_max, LANE), _round_up(indim, LANE))
    tn = min(_round_up(tn_max, LANE), _round_up(outdim, LANE))
    Kp = _round_up(indim, tk)
    Np = _round_up(outdim, tn)

    wt_p = jnp.pad(jnp.transpose(w), ((0, Kp - indim), (0, Np - outdim)))  # [Kp, Np]
    if compute_dtype is not None:
        wt_p = wt_p.astype(compute_dtype)
    # Zero-padded gamma columns make padded outputs exactly 0 (no NaN from rsqrt(eps)).
    g_p = jnp.pad(gamma, (0, Np - outdim)).reshape(1, Np).astype(jnp.float32)
    be_p = jnp.pad(beta, (0, Np - outdim)).reshape(1, Np).astype(jnp.float32)

    return dict(wt_p=wt_p, g_p=g_p, be_p=be_p, tk=tk, tn=tn, Kp=Kp, Np=Np,
                indim=indim, outdim=outdim, compute_dtype=compute_dtype)


def subkeycolumn_forward(x, params):
    """x: [B, indim]; params: output of prepare_params. Returns [B, indim//2] float32."""
    B, indim = x.shape
    assert indim == params["indim"]
    # PyTorch BatchNorm1d raises for batch size 1 in training; refuse it too.
    assert B > 1, "training-mode BatchNorm requires batch size > 1"

    Kp, Np = params["Kp"], params["Np"]
    tk, tn = params["tk"], params["tn"]
    outdim = params["outdim"]
    wt_p, g_p, be_p = params["wt_p"], params["g_p"], params["be_p"]

    x_p = jnp.pad(x, ((0, 0), (0, Kp - indim)))
    if params["compute_dtype"] is not None:
        x_p = x_p.astype(params["compute_dtype"])

    nt, kt = Np // tn, Kp // tk

    # VMEM budget: double-buffered x and Wt blocks + resident f32 output block + params.
    stream_bytes = jnp.dtype(x_p.dtype).itemsize
    vmem_est = 2 * (B * tk + tk * tn) * stream_bytes + 2 * B * tn * 4 + 4 * tn * 4
    vmem_limit = int(min(max(2 * vmem_est + (1 << 20), 32 * 1024 * 1024),
                         56 * 1024 * 1024))

    out_p = pl.pallas_call(
        _subkeycolumn_kernel,
        out_shape=jax.ShapeDtypeStruct((B, Np), jnp.float32),
        grid=(nt, kt),                                   # N parallel, K reduction (last)
        in_specs=[
            pl.BlockSpec((B, tk), lambda n, k: (0, k)),  # x    : K-tiled
            pl.BlockSpec((tk, tn), lambda n, k: (k, n)), # Wt   : K- and N-tiled, lane-dense
            pl.BlockSpec((1, tn), lambda n, k: (0, n)),  # gamma
            pl.BlockSpec((1, tn), lambda n, k: (0, n)),  # beta
        ],
        out_specs=pl.BlockSpec((B, tn), lambda n, k: (0, n)),  # resident across K
        compiler_params=pltpu.CompilerParams(
            dimension_semantics=("parallel", "arbitrary"),
            vmem_limit_bytes=vmem_limit,
        ),
    )(x_p, wt_p, g_p, be_p)

    return out_p[:, :outdim]


def _reference(x, w, b, gamma, beta):
    y = x @ w.T + b
    mean = jnp.mean(y, axis=0, keepdims=True)
    var = jnp.mean((y - mean) ** 2, axis=0, keepdims=True)
    return gamma * (y - mean) / jnp.sqrt(var + EPS) + beta


if __name__ == "__main__":
    key = jax.random.PRNGKey(0)
    B, indim = 8, 32
    outdim = indim // 2

    kx, kw, kb = jax.random.split(key, 3)
    x = jax.random.normal(kx, (B, indim), dtype=jnp.float32)

    # Deterministic parameter init (shapes from module __init__):
    #   Linear(indim, indim//2): W [indim//2, indim], b [indim//2]
    #   BatchNorm1d(indim//2):   gamma ones, beta zeros
    bound = 1.0 / jnp.sqrt(jnp.float32(indim))
    w = jax.random.uniform(kw, (outdim, indim), jnp.float32, -bound, bound)
    b = jax.random.uniform(kb, (outdim,), jnp.float32, -bound, bound)
    gamma = jnp.ones((outdim,), jnp.float32)
    beta = jnp.zeros((outdim,), jnp.float32)

    params = prepare_params(w, b, gamma, beta)            # hoisted, cacheable weight prep
    out = subkeycolumn_forward(x, params)
    out = jax.block_until_ready(out)

    ref = _reference(x, w, b, gamma, beta)
    assert out.shape == (B, outdim)
    assert jnp.allclose(out, ref, atol=1e-4, rtol=1e-4), "mismatch vs reference"

    print("KERNEL_OK")
</pallas_src>

<mosaic_0001>
module attributes {stable_mosaic.version = 11 : i64} {
  func.func @_subkeycolumn_kernel(%arg0: i32, %arg1: i32, %arg2: memref<8x128xf32, #tpu.memory_space<vmem>>, %arg3: memref<128x128xf32, #tpu.memory_space<vmem>>, %arg4: memref<1x128xf32, #tpu.memory_space<vmem>>, %arg5: memref<1x128xf32, #tpu.memory_space<vmem>>, %arg6: memref<8x128xf32, #tpu.memory_space<vmem>>) attributes {dimension_semantics = [#tpu.dimension_semantics<parallel>, #tpu.dimension_semantics<arbitrary>], iteration_bounds = array<i64: 1, 1>, scalar_prefetch = 0 : i64, scratch_operands = 0 : i64, tpu.core_type = #tpu.core_type<tc>, window_params = [{transform_indices = @transform_0, window_bounds = array<i64: 8, 128>}, {transform_indices = @transform_1, window_bounds = array<i64: 128, 128>}, {transform_indices = @transform_2, window_bounds = array<i64: 1, 128>}, {transform_indices = @transform_3, window_bounds = array<i64: 1, 128>}, {transform_indices = @transform_4, window_bounds = array<i64: 8, 128>}]} {
    %c0_i32 = arith.constant 0 : i32
    %0 = arith.cmpi eq, %arg1, %c0_i32 : i32
    %1 = arith.extui %0 : i1 to i32
    %c0_i32_0 = arith.constant 0 : i32
    %2 = arith.cmpi ne, %1, %c0_i32_0 : i32
    scf.if %2 {
      %cst_10 = arith.constant 0.000000e+00 : f32
      %12 = vector.broadcast %cst_10 : f32 to vector<8x128xf32>
      %c0_11 = arith.constant 0 : index
      %c0_12 = arith.constant 0 : index
      %13 = vector.load %arg6[%c0_11, %c0_12] : memref<8x128xf32, #tpu.memory_space<vmem>>, vector<8x128xf32>
      tpu.vector_store %arg6[%c0_11, %c0_12], %12 {strides = array<i32>} : memref<8x128xf32, #tpu.memory_space<vmem>>, vector<8x128xf32>,
    } else {
    }
    %c0 = arith.constant 0 : index
    %c0_1 = arith.constant 0 : index
    %3 = vector.load %arg6[%c0, %c0_1] : memref<8x128xf32, #tpu.memory_space<vmem>>, vector<8x128xf32>
    %c0_2 = arith.constant 0 : index
    %c0_3 = arith.constant 0 : index
    %4 = vector.load %arg2[%c0_2, %c0_3] : memref<8x128xf32, #tpu.memory_space<vmem>>, vector<8x128xf32>
    %c0_4 = arith.constant 0 : index
    %c0_5 = arith.constant 0 : index
    %5 = vector.load %arg3[%c0_4, %c0_5] : memref<128x128xf32, #tpu.memory_space<vmem>>, vector<128x128xf32>
    %cst = arith.constant dense<0.000000e+00> : vector<8x128xf32>
    %6 = tpu.matmul %4, %5, %cst {dimension_numbers = #tpu.dot_dimension_numbers<[1], [0], [0], [1], [0, 0, 1, 1], [], []>} : vector<8x128xf32>, vector<128x128xf32>, vector<8x128xf32> -> vector<8x128xf32>
    %7 = arith.addf %3, %6 : vector<8x128xf32>
    %c0_6 = arith.constant 0 : index
    %c0_7 = arith.constant 0 : index
    %8 = vector.load %arg6[%c0_6, %c0_7] : memref<8x128xf32, #tpu.memory_space<vmem>>, vector<8x128xf32>
    tpu.vector_store %arg6[%c0_6, %c0_7], %7 {strides = array<i32>} : memref<8x128xf32, #tpu.memory_space<vmem>>, vector<8x128xf32>,
    %c0_i32_8 = arith.constant 0 : i32
    %9 = arith.cmpi eq, %arg1, %c0_i32_8 : i32
    %10 = arith.extui %9 : i1 to i32
    %c0_i32_9 = arith.constant 0 : i32
    %11 = arith.cmpi ne, %10, %c0_i32_9 : i32
    scf.if %11 {
      %c0_10 = arith.constant 0 : index
      %c0_11 = arith.constant 0 : index
      %12 = vector.load %arg6[%c0_10, %c0_11] : memref<8x128xf32, #tpu.memory_space<vmem>>, vector<8x128xf32>
      %cst_12 = arith.constant dense<0.000000e+00> : vector<128xf32>
      %13 = vector.multi_reduction <add>, %12, %cst_12 [0] : vector<8x128xf32> to vector<128xf32>
      %14 = vector.shape_cast %13 : vector<128xf32> to vector<1x128xf32>
      %cst_13 = arith.constant 8.000000e+00 : f32
      %15 = vector.broadcast %cst_13 : f32 to vector<1x128xf32>
      %16 = arith.divf %14, %15 : vector<1x128xf32>
      %17 = vector.broadcast %16 : vector<1x128xf32> to vector<8x128xf32>
      %18 = arith.subf %12, %17 : vector<8x128xf32>
      %19 = arith.mulf %18, %18 : vector<8x128xf32>
      %cst_14 = arith.constant dense<0.000000e+00> : vector<128xf32>
      %20 = vector.multi_reduction <add>, %19, %cst_14 [0] : vector<8x128xf32> to vector<128xf32>
      %21 = vector.shape_cast %20 : vector<128xf32> to vector<1x128xf32>
      %cst_15 = arith.constant 8.000000e+00 : f32
      %22 = vector.broadcast %cst_15 : f32 to vector<1x128xf32>
      %23 = arith.divf %21, %22 : vector<1x128xf32>
      %c0_16 = arith.constant 0 : index
      %c0_17 = arith.constant 0 : index
      %24 = vector.load %arg4[%c0_16, %c0_17] : memref<1x128xf32, #tpu.memory_space<vmem>>, vector<1x128xf32>
      %cst_18 = arith.constant 9.99999974E-6 : f32
      %25 = vector.broadcast %cst_18 : f32 to vector<1x128xf32>
      %26 = arith.addf %23, %25 : vector<1x128xf32>
      %27 = math.rsqrt %26 : vector<1x128xf32>
      %28 = arith.mulf %24, %27 : vector<1x128xf32>
      %29 = vector.broadcast %28 : vector<1x128xf32> to vector<8x128xf32>
      %30 = arith.mulf %18, %29 : vector<8x128xf32>
      %c0_19 = arith.constant 0 : index
      %c0_20 = arith.constant 0 : index
      %31 = vector.load %arg5[%c0_19, %c0_20] : memref<1x128xf32, #tpu.memory_space<vmem>>, vector<1x128xf32>
      %32 = vector.broadcast %31 : vector<1x128xf32> to vector<8x128xf32>
      %33 = arith.addf %30, %32 : vector<8x128xf32>
      %c0_21 = arith.constant 0 : index
      %c0_22 = arith.constant 0 : index
      %34 = vector.load %arg6[%c0_21, %c0_22] : memref<8x128xf32, #tpu.memory_space<vmem>>, vector<8x128xf32>
      tpu.vector_store %arg6[%c0_21, %c0_22], %33 {strides = array<i32>} : memref<8x128xf32, #tpu.memory_space<vmem>>, vector<8x128xf32>,
    } else {
    }
    return
  }
  func.func @transform_0(%arg0: i32, %arg1: i32) -> (i32, i32) {
    %c0_i32 = arith.constant 0 : i32
    %c0_i32_0 = arith.constant 0 : i32
    return %c0_i32, %arg1 : i32, i32
  }
  func.func @transform_1(%arg0: i32, %arg1: i32) -> (i32, i32) {
    %c0_i32 = arith.constant 0 : i32
    return %arg1, %arg0 : i32, i32
  }
  func.func @transform_2(%arg0: i32, %arg1: i32) -> (i32, i32) {
    %c0_i32 = arith.constant 0 : i32
    %c0_i32_0 = arith.constant 0 : i32
    return %c0_i32, %arg0 : i32, i32
  }
  func.func @transform_3(%arg0: i32, %arg1: i32) -> (i32, i32) {
    %c0_i32 = arith.constant 0 : i32
    %c0_i32_0 = arith.constant 0 : i32
    return %c0_i32, %arg0 : i32, i32
  }
  func.func @transform_4(%arg0: i32, %arg1: i32) -> (i32, i32) {
    %c0_i32 = arith.constant 0 : i32
    %c0_i32_0 = arith.constant 0 : i32
    return %c0_i32, %arg0 : i32, i32
  }
}

</mosaic_0001>

<bundles_post_ra>
// kernel: tpu_custom_call.1
= control target key start
LH: loop header
LB: loop body
LE: loop exit
PB: predicated region body
PF: predicated region fallthrough
CT: control target
= control target key end

     0   :  { %9 = vsyncpa [#allocation3], 0  ;;  %s297_s0 = inlined_call_operand.hbm [shape: f32[8,128], index: 0, kind: input, shape index: {}]   ;;  %s298_s1 = inlined_call_operand.hbm [shape: f32[128,128], index: 1, kind: input, shape index: {}]   ;;  %s299_s2 = inlined_call_operand.vmem [shape: f32[1,128], index: 2, kind: input, shape index: {}]   ;;  %s300_s3 = inlined_call_operand.vmem [shape: f32[1,128], index: 3, kind: input, shape index: {}]   ;;  %s301_s4 = inlined_call_operand.hbm [shape: f32[8,128], index: 4, kind: output, shape index: {}]  }
   0x1   :  { %10 = vsyncpa [#allocation6], 0 }
   0x2   :  { %11 = vsyncpa [#allocation4], 0  ;;  %s17_s17 = sshll.u32 %s297_s0, 4  ;;  %s251_s18 = smov [#allocation2]   ;;  %s18_s17 = int_to_ptr.hbm [resolvable:$true] %s17_s17 }
   0x3   :  { %s19_s19 = sshll.u32 %s251_s18, 4  ;;  %s27_s22 = sshll.u32 %s298_s1, 4  ;;  %s20_s19 = int_to_ptr.vmem [resolvable:$true] %s19_s19  ;;  %s28_s22 = int_to_ptr.hbm [resolvable:$true] %s27_s22 }
   0x4   :  { %22 = dma.hbm_to_vmem [thread:$0]  %s18_s17, 128, %s20_s19, [#allocation3]  }
   0x5   :  { %s252_s23 = smov [#allocation5]   ;;  %s253_s25 = smov 128  }
   0x6   :  { %s29_s24 = sshll.u32 %s252_s23, 4  ;;  %s254_s26 = smov 8   ;;  %s30_s24 = int_to_ptr.vmem [resolvable:$true] %s29_s24 }
   0x7   :  { %35 = dma.hbm_to_vmem [thread:$0]  %s28_s22, 2048, %s30_s24, [#allocation6], %s253_s25, %s253_s25, %s254_s26  }
   0x8   :  { %245 = dma.done.wait [#allocation3], 128  }
   0x9   :  { %246 = vsyncadd [#allocation3], 4294967168 }
   0xa   :  { %247 = dma.done.wait [#allocation6], 2048  }
   0xb   :  { %248 = vsyncadd [#allocation6], 4294965248  ;;  %v70_v0 = vld [vmem:[#allocation5 + $0x78] sm:$0xff]  ;;  %v69_v1 = vld [vmem:[#allocation5 + $0x70] sm:$0xff]  ;;  %v255_v17 = vmov 8.0   ;;  %s256_s29 = smov [#allocation7]  }
   0xc   :  { %71 = vmatpush.msra.mxu0 %v70_v0  ;;  %v68_v2 = vld [vmem:[#allocation5 + $0x68] sm:$0xff]  ;;  %v67_v3 = vld [vmem:[#allocation5 + $0x60] sm:$0xff]  ;;  %v66_v4 = vld [vmem:[#allocation5 + $0x58] sm:$0xff]  ;;  %169 = vrcp.f32 %v255_v17  ;;  %s148_s30 = sshll.u32 %s256_s29, 4  ;;  %s150_s7 = sshll.u32 %s301_s4, 4  ;;  %s149_s30 = int_to_ptr.vmem [resolvable:$true] %s148_s30  ;;  %s151_s7 = int_to_ptr.hbm [resolvable:$true] %s150_s7 }
   0xd   :  { %v65_v5 = vld [vmem:[#allocation5 + $0x50] sm:$0xff]  ;;  %v64_v6 = vld [vmem:[#allocation5 + $0x48] sm:$0xff]  ;;  %v63_v7 = vld [vmem:[#allocation5 + $0x40] sm:$0xff] }
   0xe   :  { %72 = vmatpush.msra.mxu0 %v69_v1  ;;  %v62_v8 = vld [vmem:[#allocation5 + $0x38] sm:$0xff]  ;;  %v61_v9 = vld [vmem:[#allocation5 + $0x30] sm:$0xff]  ;;  %v60_v10 = vld [vmem:[#allocation5 + $0x28] sm:$0xff] }
   0xf   :  { %v59_v11 = vld [vmem:[#allocation5 + $0x20] sm:$0xff]  ;;  %v58_v12 = vld [vmem:[#allocation5 + $0x18] sm:$0xff]  ;;  %v57_v13 = vld [vmem:[#allocation5 + $0x10] sm:$0xff] }
  0x10   :  { %73 = vmatpush.msra.mxu0 %v68_v2  ;;  %v56_v14 = vld [vmem:[#allocation5 + $0x8] sm:$0xff]  ;;  %v55_v15 = vld [vmem:[#allocation5] sm:$0xff]  ;;  %v54_v16 = vld [vmem:[#allocation2] sm:$0xff] }
  0x11   :  { %v120_v47 = vld [vmem:[%s299_s2] sm:$0x1] }
  0x12   :  { %74 = vmatpush.msra.mxu0 %v67_v3  ;;  %v170_v18 = vpop.eup %169  ;;  %v168_v52 = vld [vmem:[%s300_s3] ss:$0 sm:$0xff] }
  0x13   :  { %v104_v19 = vmul.f32 8.0, %v170_v18  ;;  %vm108_vm0 = vweird.f32 %v170_v18 }
  0x14   :  { %75 = vmatpush.msra.mxu0 %v66_v4 }
  0x15   :  { %v105_v21 = vsub.f32 1.0, %v104_v19 }
  0x16   :  { %76 = vmatpush.msra.mxu0 %v65_v5 }
  0x17   :  { %v106_v23 = vmul.f32 %v170_v18, %v105_v21 }
  0x18   :  { %77 = vmatpush.msra.mxu0 %v64_v6 }
  0x19   :  { %v107_v26 = vadd.f32 %v170_v18, %v106_v23 }
  0x1a   :  { %78 = vmatpush.msra.mxu0 %v63_v7 }
  0x1b   :  { %v109_v29 = vsel %vm108_vm0, %v170_v18, %v107_v26 }
  0x1c   :  { %79 = vmatpush.msra.mxu0 %v62_v8 }
  0x1e   :  { %80 = vmatpush.msra.mxu0 %v61_v9 }
  0x20   :  { %81 = vmatpush.msra.mxu0 %v60_v10 }
  0x22   :  { %82 = vmatpush.msra.mxu0 %v59_v11 }
  0x24   :  { %83 = vmatpush.msra.mxu0 %v58_v12 }
  0x26   :  { %84 = vmatpush.msra.mxu0 %v57_v13 }
  0x28   :  { %85 = vmatpush.msra.mxu0 %v56_v14 }
  0x2a   :  { %86 = vmatpush.msra.mxu0 %v55_v15 }
  0x2b   :  { %87 = vmatmul.f32.vlgmr.msra.gmra.mxu0 %v54_v16 }
  0xa8   :  { %v88_v20 = vpop.f32.mrf.mxu0 }
  0xa9   :  { %v97_v22 = vrot.slane %v88_v20, 4 }
  0xab   :  { %v98_v24 = vadd.f32 %v97_v22, %v88_v20 }
  0xad   :  { %v99_v25 = vrot.slane %v98_v24, 2 }
  0xaf   :  { %v100_v27 = vadd.f32 %v99_v25, %v98_v24 }
  0xb1   :  { %v101_v28 = vrot.slane %v100_v27, 1 }
  0xb3   :  { %v102_v30 = vadd.f32 %v101_v28, %v100_v27 }
  0xb5   :  { %v110_v31 = vmul.f32 %v109_v29, %v102_v30 }
  0xb7   :  { %v111_v32 = vsub.f32 %v88_v20, %v110_v31 }
  0xb9   :  { %v112_v33 = vmul.f32 %v111_v32, %v111_v32 }
  0xbb   :  { %v113_v34 = vrot.slane %v112_v33, 4 }
  0xbd   :  { %v114_v35 = vadd.f32 %v113_v34, %v112_v33 }
  0xbf   :  { %v115_v36 = vrot.slane %v114_v35, 2 }
  0xc1   :  { %v116_v37 = vadd.f32 %v115_v36, %v114_v35 }
  0xc3   :  { %v117_v38 = vrot.slane %v116_v37, 1 }
  0xc5   :  { %v118_v39 = vadd.f32 %v117_v38, %v116_v37 }
  0xc7   :  { %v119_v40 = vmul.f32 %v118_v39, %v109_v29 }
  0xc9   :  { %v121_v41 = vadd.f32 1e-05, %v119_v40 }
  0xcb   :  { %171 = vrsqrt.f32 %v121_v41  ;;  %vm128_vm2 = vweird.f32 %v121_v41 }
  0xd1   :  { %v172_v42 = vpop.eup %171 }
  0xd2   :  { %v123_v43 = vmul.f32 %v172_v42, %v121_v41  ;;  %vm129_vm1 = vweird.f32 %v172_v42 }
  0xd3   :  { %vm130_vm3 = vmor %vm128_vm2, %vm129_vm1 }
  0xd4   :  { %v124_v44 = vmul.f32 %v172_v42, %v123_v43 }
  0xd6   :  { %v125_v45 = vmul.f32 0.5, %v124_v44 }
  0xd8   :  { %v126_v46 = vsub.f32 1.5, %v125_v45 }
  0xda   :  { %v127_v48 = vmul.f32 %v172_v42, %v126_v46 }
  0xdc   :  { %v131_v49 = vsel %vm130_vm3, %v172_v42, %v127_v48 }
  0xdd   :  { %v132_v50 = vmul.f32 %v131_v49, %v120_v47 }
  0xdf   :  { %v134_v51 = vperm.slane %v132_v50, 0 }
  0xe1   :  { %v136_v53 = vmul.f32 %v134_v51, %v111_v32 }
  0xe3   :  { %v141_v54 = vadd.f32 %v168_v52, %v136_v53 }
  0xe5   :  { %142 = vst [vmem:[#allocation7] sm:$0xff] %v141_v54 }
  0xe6   :  { %153 = dma.vmem_to_hbm [thread:$0]  %s149_s30, 128, %s151_s7, [#allocation4]  }
  0xe7   :  { %249 = dma.done.wait [#allocation4], 128  }
  0xe8   :  { %250 = vsyncadd [#allocation4], 4294967168 }
  0xe9   :  { %158 = vsyncpa [#allocation3], 1 }
  0xea   :  { %159 = vsyncpa [#allocation6], 1 }
  0xeb   :  { %160 = vsyncpa [#allocation4], 1 }

</bundles_post_ra>
